<compile_context>
chip_gen: v6e
topology: v6e:2x2x1
jax: 0.10.0
libtpu: 0.0.40
codegen_flags: <defaults>
</compile_context>

<pallas_src>
import functools
import math

import jax
import jax.numpy as jnp
from jax.experimental import pallas as pl
from jax.experimental.pallas import tpu as pltpu


def _layernorm_kernel(alpha_ref, bias_ref, x_ref, o_ref, *, eps):
    # alpha_ref, bias_ref: (1,) f32 in SMEM.  x_ref / o_ref: (tm, D) in VMEM.
    x = x_ref[...].astype(jnp.float32)
    d = x.shape[-1]

    mean = jnp.sum(x, axis=-1, keepdims=True) * (1.0 / d)
    xc = x - mean
    # torch.std default is the UNBIASED estimator (divide by D - 1).
    var = jnp.sum(xc * xc, axis=-1, keepdims=True) * (1.0 / max(d - 1, 1))
    std = jnp.sqrt(var)
    inv = 1.0 / (std + eps)

    alpha = alpha_ref[0]
    bias = bias_ref[0]
    o_ref[...] = (alpha * (xc * inv) + bias).astype(o_ref.dtype)


@functools.partial(jax.jit, static_argnames=("eps", "tm"))
def layer_normalization(x, alpha, bias, *, eps=1e-6, tm=128):
    """LayerNorm over the last axis of x (any leading dims), scalar alpha/bias."""
    orig_shape = x.shape
    d = orig_shape[-1]
    n = math.prod(orig_shape[:-1])
    x2d = x.reshape(n, d)

    # Row tile: large for real workloads, but never bigger than the 8-aligned
    # total row count (so tiny inputs don't over-pad).
    tm_eff = min(tm, ((n + 7) // 8) * 8)
    n_pad = pl.cdiv(n, tm_eff) * tm_eff
    if n_pad != n:
        # Padded rows are all-zero; their stats are garbage but finite and
        # they are sliced away below.
        x2d = jnp.pad(x2d, ((0, n_pad - n), (0, 0)))

    alpha_s = alpha.reshape(1).astype(jnp.float32)
    bias_s = bias.reshape(1).astype(jnp.float32)

    itemsize = x.dtype.itemsize
    # Double-buffered (tm, D) input + output tiles, plus slack.
    vmem_needed = 4 * tm_eff * d * itemsize + (2 << 20)
    vmem_limit = int(min(max(vmem_needed, 16 << 20), 64 << 20))

    cost = pl.CostEstimate(
        flops=10 * n_pad * d,
        transcendentals=2 * n_pad,          # sqrt + reciprocal per row
        bytes_accessed=2 * n_pad * d * itemsize,
    )

    out2d = pl.pallas_call(
        functools.partial(_layernorm_kernel, eps=eps),
        out_shape=jax.ShapeDtypeStruct((n_pad, d), x.dtype),
        grid_spec=pltpu.PrefetchScalarGridSpec(
            num_scalar_prefetch=0,
            grid=(n_pad // tm_eff,),
            in_specs=[
                pl.BlockSpec(memory_space=pltpu.MemorySpace.SMEM),   # alpha
                pl.BlockSpec(memory_space=pltpu.MemorySpace.SMEM),   # bias
                pl.BlockSpec((tm_eff, d), lambda i: (i, 0)),         # x rows
            ],
            out_specs=pl.BlockSpec((tm_eff, d), lambda i: (i, 0)),
        ),
        compiler_params=pltpu.CompilerParams(
            dimension_semantics=("parallel",),
            vmem_limit_bytes=vmem_limit,
        ),
        cost_estimate=cost,
    )(alpha_s, bias_s, x2d)

    if n_pad != n:
        out2d = out2d[:n]
    return out2d.reshape(orig_shape)


def _reference_layernorm(x, alpha, bias, eps=1e-6):
    mean = jnp.mean(x, axis=-1, keepdims=True)
    std = jnp.std(x, axis=-1, keepdims=True, ddof=1)   # unbiased, like torch.std
    return alpha * (x - mean) / (std + eps) + bias


if __name__ == "__main__":
    key = jax.random.PRNGKey(0)
    kx1, kx2, ka, kb = jax.random.split(key, 4)

    # Test 1: lane-dense last dim (128), params at torch init (alpha=1, bias=0).
    batch, seq, d_model = 2, 8, 128
    x = jax.random.normal(kx1, (batch, seq, d_model), jnp.float32)
    alpha = jnp.ones((1,), jnp.float32)
    bias = jnp.zeros((1,), jnp.float32)

    out = layer_normalization(x, alpha, bias, eps=1e-6)
    out = jax.block_until_ready(out)
    ref = _reference_layernorm(x, alpha, bias, eps=1e-6)
    assert out.shape == x.shape
    assert jnp.allclose(out, ref, atol=1e-5, rtol=1e-5)

    # Test 2: odd shapes (exercise row padding) + non-trivial scalar params.
    x2 = jax.random.normal(kx2, (3, 5, 96), jnp.float32)
    alpha2 = jax.random.normal(ka, (1,), jnp.float32)
    bias2 = jax.random.normal(kb, (1,), jnp.float32)

    out2 = layer_normalization(x2, alpha2, bias2, eps=1e-6)
    out2 = jax.block_until_ready(out2)
    ref2 = _reference_layernorm(x2, alpha2, bias2, eps=1e-6)
    assert out2.shape == x2.shape
    assert jnp.allclose(out2, ref2, atol=1e-5, rtol=1e-5)

    print("KERNEL_OK")
</pallas_src>

<mosaic_0001>
module attributes {stable_mosaic.version = 11 : i64} {
  func.func @_layernorm_kernel(%arg0: i32, %arg1: memref<1xf32, #tpu.memory_space<smem>>, %arg2: memref<1xf32, #tpu.memory_space<smem>>, %arg3: memref<16x128xf32, #tpu.memory_space<vmem>>, %arg4: memref<16x128xf32, #tpu.memory_space<vmem>>) attributes {dimension_semantics = [#tpu.dimension_semantics<parallel>], iteration_bounds = array<i64: 1>, scalar_prefetch = 0 : i64, scratch_operands = 0 : i64, tpu.core_type = #tpu.core_type<tc>, window_params = [{transform_indices = @transform_0, window_bounds = array<i64: 1>}, {transform_indices = @transform_1, window_bounds = array<i64: 1>}, {transform_indices = @transform_2, window_bounds = array<i64: 16, 128>}, {transform_indices = @transform_3, window_bounds = array<i64: 16, 128>}]} {
    %c0 = arith.constant 0 : index
    %c0_0 = arith.constant 0 : index
    %0 = vector.load %arg3[%c0, %c0_0] : memref<16x128xf32, #tpu.memory_space<vmem>>, vector<16x128xf32>
    %cst = arith.constant dense<0.000000e+00> : vector<16xf32>
    %1 = vector.multi_reduction <add>, %0, %cst [1] : vector<16x128xf32> to vector<16xf32>
    %2 = vector.shape_cast %1 : vector<16xf32> to vector<16x1xf32>
    %cst_1 = arith.constant 7.812500e-03 : f32
    %3 = vector.broadcast %cst_1 : f32 to vector<16x1xf32>
    %4 = arith.mulf %2, %3 : vector<16x1xf32>
    %5 = vector.broadcast %4 : vector<16x1xf32> to vector<16x128xf32>
    %6 = arith.subf %0, %5 : vector<16x128xf32>
    %7 = arith.mulf %6, %6 : vector<16x128xf32>
    %cst_2 = arith.constant dense<0.000000e+00> : vector<16xf32>
    %8 = vector.multi_reduction <add>, %7, %cst_2 [1] : vector<16x128xf32> to vector<16xf32>
    %9 = vector.shape_cast %8 : vector<16xf32> to vector<16x1xf32>
    %cst_3 = arith.constant 0.00787401571 : f32
    %10 = vector.broadcast %cst_3 : f32 to vector<16x1xf32>
    %11 = arith.mulf %9, %10 : vector<16x1xf32>
    %12 = math.sqrt %11 : vector<16x1xf32>
    %cst_4 = arith.constant 9.99999997E-7 : f32
    %13 = vector.broadcast %cst_4 : f32 to vector<16x1xf32>
    %14 = arith.addf %12, %13 : vector<16x1xf32>
    %cst_5 = arith.constant 1.000000e+00 : f32
    %15 = vector.broadcast %cst_5 : f32 to vector<16x1xf32>
    %16 = arith.divf %15, %14 : vector<16x1xf32>
    %c0_6 = arith.constant 0 : index
    %17 = memref.load %arg1[%c0_6] : memref<1xf32, #tpu.memory_space<smem>>
    %c0_7 = arith.constant 0 : index
    %18 = memref.load %arg2[%c0_7] : memref<1xf32, #tpu.memory_space<smem>>
    %19 = vector.broadcast %16 : vector<16x1xf32> to vector<16x128xf32>
    %20 = arith.mulf %6, %19 : vector<16x128xf32>
    %21 = vector.broadcast %17 : f32 to vector<16x128xf32>
    %22 = arith.mulf %21, %20 : vector<16x128xf32>
    %23 = vector.broadcast %18 : f32 to vector<16x128xf32>
    %24 = arith.addf %22, %23 : vector<16x128xf32>
    %c0_8 = arith.constant 0 : index
    %c0_9 = arith.constant 0 : index
    %25 = vector.load %arg4[%c0_8, %c0_9] : memref<16x128xf32, #tpu.memory_space<vmem>>, vector<16x128xf32>
    tpu.vector_store %arg4[%c0_8, %c0_9], %24 {strides = array<i32>} : memref<16x128xf32, #tpu.memory_space<vmem>>, vector<16x128xf32>,
    return
  }
  func.func @transform_0(%arg0: i32) -> i32 {
    %c0_i32 = arith.constant 0 : i32
    %c0_i32_0 = arith.constant 0 : i32
    return %c0_i32 : i32
  }
  func.func @transform_1(%arg0: i32) -> i32 {
    %c0_i32 = arith.constant 0 : i32
    %c0_i32_0 = arith.constant 0 : i32
    return %c0_i32 : i32
  }
  func.func @transform_2(%arg0: i32) -> (i32, i32) {
    %c0_i32 = arith.constant 0 : i32
    %c0_i32_0 = arith.constant 0 : i32
    return %arg0, %c0_i32 : i32, i32
  }
  func.func @transform_3(%arg0: i32) -> (i32, i32) {
    %c0_i32 = arith.constant 0 : i32
    %c0_i32_0 = arith.constant 0 : i32
    return %arg0, %c0_i32 : i32, i32
  }
}

</mosaic_0001>

<bundles_post_ra>
// kernel: layer_normalization.1
= control target key start
LH: loop header
LB: loop body
LE: loop exit
PB: predicated region body
PF: predicated region fallthrough
CT: control target
= control target key end

     0   :  { %10 = vsyncpa [#allocation5], 0  ;;  %s196_s0 = inlined_call_operand.<no memory space> [shape: f32[1], index: 0, kind: input, shape index: {}]   ;;  %s197_s1 = inlined_call_operand.<no memory space> [shape: f32[1], index: 1, kind: input, shape index: {}]   ;;  %s198_s2 = inlined_call_operand.hbm [shape: f32[16,128], index: 2, kind: input, shape index: {}]   ;;  %s199_s3 = inlined_call_operand.hbm [shape: f32[16,128], index: 3, kind: output, shape index: {}]  }
   0x1   :  { %11 = vsyncpa [#allocation6], 0  ;;  %s154_s12 = smov [#allocation4]  }
   0x2   :  { %s21_s13 = sshll.u32 %s154_s12, 4  ;;  %s22_s13 = int_to_ptr.vmem [resolvable:$true] %s21_s13 }
   0x3   :  { %s118_s14 = scalar_lea.vmem %s22_s13, 256  ;;  %p123_p1 = scmp.lt.s32.totalorder %s22_s13, %s22_s13 }
   0x4   :  { %p119_p0 = scmp.ne.s32.totalorder %s22_s13, %s118_s14  ;;  %p124_p2 = scmp.lt.s32.totalorder %s118_s14, %s118_s14 }
   0x6   :  { %p125_p3 = por %p124_p2, %p123_p1 }
   0x8   :  { %p126_p4 = pnand %p125_p3, %p119_p0 }
   0xa   :  { %129 = shalt.err (!%p126_p4)
}
   0xb   :  { %s155_s15 = smov 128   ;;  %s156_s16 = smov 8  }
   0xc   :  { %27 = dma.hbm_to_vmem [thread:$0]  %s198_s2, 256, %s22_s13, [#allocation5], %s155_s15, %s155_s15, %s156_s16  }
   0xd   :  { %150 = dma.done.wait [#allocation5], 256  }
   0xe   :  { %151 = vsyncadd [#allocation5], 4294967040  ;;  %v31_v0 = vld [vmem:[#allocation4] sm:$0xff]  ;;  %v32_v1 = vld [vmem:[#allocation4 + $0x8] sm:$0xff]  ;;  %v73_v27 = vstv %s196_s0  ;;  %v76_v29 = vstv %s197_s1  ;;  %s157_s22 = smov [#allocation7]  }
   0xf   :  { %33 = vadd.xlane.f32.xlu0 %v31_v0  ;;  %s86_s23 = sshll.u32 %s157_s22, 4  ;;  %s87_s23 = int_to_ptr.vmem [resolvable:$true] %s86_s23 }
  0x10   :  { %s130_s24 = scalar_lea.vmem %s87_s23, 256  ;;  %p135_p6 = scmp.lt.s32.totalorder %s87_s23, %s87_s23 }
  0x11   :  { %p131_p5 = scmp.ne.s32.totalorder %s87_s23, %s130_s24  ;;  %p136_p7 = scmp.lt.s32.totalorder %s130_s24, %s130_s24 }
  0x13   :  { %35 = vadd.xlane.f32.xlu0 %v32_v1  ;;  %p137_p8 = por %p136_p7, %p135_p6 }
  0x15   :  { %p138_p9 = pnand %p137_p8, %p131_p5 }
  0x98   :  { %v34_v2 = vpop.xlane.xlu0 %33 }
  0x99   :  { %v37_v3 = vmul.f32 0.0078125, %v34_v2 }
  0x9b   :  { %v39_v4 = vsub.f32 %v31_v0, %v37_v3 }
  0x9c   :  { %v36_v5 = vpop.xlane.xlu0 %35 }
  0x9d   :  { %v38_v6 = vmul.f32 0.0078125, %v36_v5  ;;  %v41_v7 = vmul.f32 %v39_v4, %v39_v4 }
  0x9f   :  { %v40_v8 = vsub.f32 %v32_v1, %v38_v6  ;;  %43 = vadd.xlane.f32.xlu1 %v41_v7 }
  0xa1   :  { %v42_v9 = vmul.f32 %v40_v8, %v40_v8 }
  0xa3   :  { %45 = vadd.xlane.f32.xlu1 %v42_v9 }
 0x128   :  { %v44_v10 = vpop.xlane.xlu1 %43 }
 0x129   :  { %v47_v11 = vmul.f32 0.007874016, %v44_v10 }
 0x12b   :  { %102 = vrsqrt.f32 %v47_v11  ;;  %vm51_vm0 = vcmp.eq.f32.partialorder %v47_v11, inf  ;;  %v54_v16 = vand.u32 2147483648, %v47_v11  ;;  %vm53_vm1 = vcmp.eq.f32.partialorder %v47_v11, 0.0 }
 0x12c   :  { %v46_v12 = vpop.xlane.xlu1 %45 }
 0x12d   :  { %v48_v13 = vmul.f32 0.007874016, %v46_v12 }
 0x12f   :  { %104 = vrsqrt.f32 %v48_v13  ;;  %vm58_vm2 = vcmp.eq.f32.partialorder %v48_v13, inf  ;;  %v61_v22 = vand.u32 2147483648, %v48_v13  ;;  %vm60_vm3 = vcmp.eq.f32.partialorder %v48_v13, 0.0 }
 0x138   :  { %v103_v14 = vpop.eup %102 }
 0x139   :  { %v50_v15 = vmul.f32 %v103_v14, %v47_v11 }
 0x13b   :  { %v52_v17 = vsel %vm51_vm0, %v47_v11, %v50_v15 }
 0x13c   :  { %v105_v18 = vpop.eup %104  ;;  %v55_v19 = vsel %vm53_vm1, %v54_v16, %v52_v17 }
 0x13d   :  { %v63_v20 = vadd.f32 1e-06, %v55_v19  ;;  %v57_v21 = vmul.f32 %v105_v18, %v48_v13 }
 0x13f   :  { %106 = vrcp.f32 %v63_v20  ;;  %v59_v23 = vsel %vm58_vm2, %v48_v13, %v57_v21 }
 0x140   :  { %v62_v24 = vsel %vm60_vm3, %v61_v22, %v59_v23 }
 0x141   :  { %v64_v25 = vadd.f32 1e-06, %v62_v24 }
 0x143   :  { %108 = vrcp.f32 %v64_v25 }
 0x14c   :  { %v107_v26 = vpop.eup %106 }
 0x14d   :  { %v71_v28 = vmul.f32 %v107_v26, %v39_v4 }
 0x14f   :  { %v74_v30 = vmul.f32 %v73_v27, %v71_v28 }
 0x150   :  { %v109_v31 = vpop.eup %108 }
 0x151   :  { %v72_v32 = vmul.f32 %v109_v31, %v40_v8  ;;  %v77_v33 = vadd.f32 %v76_v29, %v74_v30 }
 0x153   :  { %v75_v34 = vmul.f32 %v73_v27, %v72_v32  ;;  %79 = vst [vmem:[#allocation7] sm:$0xff] %v77_v33 }
 0x155   :  { %v78_v35 = vadd.f32 %v76_v29, %v75_v34 }
 0x157   :  { %80 = vst [vmem:[#allocation7 + $0x8] sm:$0xff] %v78_v35 }
 0x158   :  { %141 = shalt.err (!%p138_p9)
}
 0x159   :  { %92 = dma.vmem_to_hbm [thread:$0]  %s87_s23, 256, %s199_s3, [#allocation6], %s155_s15, %s155_s15, %s156_s16  }
 0x15a   :  { %152 = dma.done.wait [#allocation6], 256  }
 0x15b   :  { %153 = vsyncadd [#allocation6], 4294967040 }
 0x15c   :  { %96 = vsyncpa [#allocation5], 1 }
 0x15d   :  { %97 = vsyncpa [#allocation6], 1 }

</bundles_post_ra>
